<compile_context>
chip_gen: v7x
topology: tpu7x:2x2x1
jax: 0.10.0
libtpu: 0.0.40
codegen_flags: <defaults>
</compile_context>

<pallas_src>
import jax
import jax.numpy as jnp
from jax.experimental import pallas as pl
from jax.experimental.pallas import tpu as pltpu

# ~4 MiB per f32 block -> ~16 MiB resident with double-buffered input + output.
_MAX_BLOCK_ELEMS = 1 << 20


def _pick_tiles(R, N):
    """Pick (tm, tn) with tm % 8 == 0, tn % 128 == 0 and tm * tn <= _MAX_BLOCK_ELEMS."""
    # Lane (last) dim: multiple of 128, capped so even an 8-row block fits the budget.
    tn = min(pl.cdiv(N, 128) * 128, _MAX_BLOCK_ELEMS // 8)
    # Sublane (second-to-last) dim: multiple of 8, tm * tn <= budget.
    row_budget = max(8, (_MAX_BLOCK_ELEMS // tn) // 8 * 8)
    tm = min(pl.cdiv(R, 8) * 8, row_budget)
    # If the row axis has only one grid step, split the lane axis so both
    # TensorCores (v7x megacore) have work.
    if pl.cdiv(R, tm) < 2 and N > 128:
        tn = min(tn, pl.cdiv(pl.cdiv(N, 128), 2) * 128)
    return tm, tn


def _make_kernel(tm):
    def unnormalize_kernel(scale_ref, offset_ref, x_ref, o_ref):
        # scale_ref / offset_ref: resident VMEM (R_pad, 1) per-row std / mean columns.
        # x_ref / o_ref:          VMEM (tm, tn) lane-dense tiles of the (R, N) view.
        row0 = pl.multiple_of(pl.program_id(0) * tm, 8)
        s = scale_ref[pl.ds(row0, tm), :]
        m = offset_ref[pl.ds(row0, tm), :]
        o_ref[...] = jnp.clip(x_ref[...] * s + m, 0.0, 1.0)

    return unnormalize_kernel


def unnormalize(x, mean, std):
    """x: f32[B, C, H, W]; mean/std: length-C vectors. Returns clamp(x*std + mean, 0, 1)."""
    B, C, H, W = x.shape
    R, N = B * C, H * W
    mean = jnp.asarray(mean, dtype=x.dtype)
    std = jnp.asarray(std, dtype=x.dtype)

    tm, tn = _pick_tiles(R, N)
    grid = (pl.cdiv(R, tm), pl.cdiv(N, tn))
    R_pad = grid[0] * tm

    # Lane-dense 2-D view + per-row scale/offset columns (channel repeats every C rows),
    # padded to the row-block grid so in-kernel slicing never goes out of bounds.
    x2 = x.reshape(R, N)
    scale = jnp.pad(jnp.tile(std, B), (0, R_pad - R), constant_values=1.0).reshape(R_pad, 1)
    offset = jnp.pad(jnp.tile(mean, B), (0, R_pad - R), constant_values=0.0).reshape(R_pad, 1)

    out2 = pl.pallas_call(
        _make_kernel(tm),
        out_shape=jax.ShapeDtypeStruct((R, N), x.dtype),
        grid=grid,
        in_specs=[
            # Tiny scale/offset columns: loaded once, resident for the whole grid.
            pl.BlockSpec((R_pad, 1), lambda i, j: (0, 0)),
            pl.BlockSpec((R_pad, 1), lambda i, j: (0, 0)),
            # Image tile.
            pl.BlockSpec((tm, tn), lambda i, j: (i, j)),
        ],
        out_specs=pl.BlockSpec((tm, tn), lambda i, j: (i, j)),
        compiler_params=pltpu.CompilerParams(
            dimension_semantics=("parallel", "parallel"),
            vmem_limit_bytes=32 * 1024 * 1024,
        ),
    )(scale, offset, x2)
    return out2.reshape(B, C, H, W)


if __name__ == "__main__":
    key = jax.random.PRNGKey(0)
    B, C, H, W = 2, 3, 16, 16          # UnNormalize hard-codes 3 channels
    x = jax.random.normal(key, (B, C, H, W), dtype=jnp.float32)

    # Deterministic "ImageNet-style" constants (module __init__ just stores them).
    mean = jnp.array([0.485, 0.456, 0.406], dtype=jnp.float32)
    std = jnp.array([0.229, 0.224, 0.225], dtype=jnp.float32)

    out = unnormalize(x, mean, std)
    out = jax.block_until_ready(out)

    # Pure-JAX reference check.
    ref = jnp.clip(x * std[None, :, None, None] + mean[None, :, None, None], 0.0, 1.0)
    assert out.shape == x.shape and out.dtype == x.dtype
    assert jnp.allclose(out, ref, atol=1e-6), "mismatch vs reference"

    print("KERNEL_OK")
</pallas_src>

<mosaic_0001>
module attributes {stable_mosaic.version = 11 : i64} {
  func.func @unnormalize_kernel(%arg0: i32, %arg1: i32, %arg2: memref<8x1xf32, #tpu.memory_space<vmem>>, %arg3: memref<8x1xf32, #tpu.memory_space<vmem>>, %arg4: memref<8x128xf32, #tpu.memory_space<vmem>>, %arg5: memref<8x128xf32, #tpu.memory_space<vmem>>) attributes {dimension_semantics = [#tpu.dimension_semantics<parallel>, #tpu.dimension_semantics<parallel>], iteration_bounds = array<i64: 1, 2>, scalar_prefetch = 0 : i64, scratch_operands = 0 : i64, tpu.core_type = #tpu.core_type<tc>, window_params = [{pipeline_mode = #tpu.pipeline_mode<synchronous>, transform_indices = @transform_0, window_bounds = array<i64: 8, 1>}, {pipeline_mode = #tpu.pipeline_mode<synchronous>, transform_indices = @transform_1, window_bounds = array<i64: 8, 1>}, {transform_indices = @transform_2, window_bounds = array<i64: 8, 128>}, {transform_indices = @transform_3, window_bounds = array<i64: 8, 128>}]} {
    %c8_i32 = arith.constant 8 : i32
    %0 = arith.muli %arg0, %c8_i32 : i32
    %1 = tpu.assume_multiple %0, 8 : i32
    %2 = arith.index_cast %1 : i32 to index
    %c0 = arith.constant 0 : index
    %3 = vector.load %arg2[%2, %c0] : memref<8x1xf32, #tpu.memory_space<vmem>>, vector<8x1xf32>
    %4 = arith.index_cast %1 : i32 to index
    %c0_0 = arith.constant 0 : index
    %5 = vector.load %arg3[%4, %c0_0] : memref<8x1xf32, #tpu.memory_space<vmem>>, vector<8x1xf32>
    %c0_1 = arith.constant 0 : index
    %c0_2 = arith.constant 0 : index
    %6 = vector.load %arg4[%c0_1, %c0_2] : memref<8x128xf32, #tpu.memory_space<vmem>>, vector<8x128xf32>
    %7 = vector.broadcast %3 : vector<8x1xf32> to vector<8x128xf32>
    %8 = arith.mulf %6, %7 : vector<8x128xf32>
    %9 = vector.broadcast %5 : vector<8x1xf32> to vector<8x128xf32>
    %10 = arith.addf %8, %9 : vector<8x128xf32>
    %cst = arith.constant 0.000000e+00 : f32
    %cst_3 = arith.constant 1.000000e+00 : f32
    %11 = vector.broadcast %cst : f32 to vector<8x128xf32>
    %12 = arith.maximumf %11, %10 : vector<8x128xf32>
    %13 = vector.broadcast %cst_3 : f32 to vector<8x128xf32>
    %14 = arith.minimumf %13, %12 : vector<8x128xf32>
    %c0_4 = arith.constant 0 : index
    %c0_5 = arith.constant 0 : index
    %15 = vector.load %arg5[%c0_4, %c0_5] : memref<8x128xf32, #tpu.memory_space<vmem>>, vector<8x128xf32>
    tpu.vector_store %arg5[%c0_4, %c0_5], %14 {strides = array<i32>} : memref<8x128xf32, #tpu.memory_space<vmem>>, vector<8x128xf32>,
    return
  }
  func.func @transform_0(%arg0: i32, %arg1: i32) -> (i32, i32) {
    %c0_i32 = arith.constant 0 : i32
    %c0_i32_0 = arith.constant 0 : i32
    %c0_i32_1 = arith.constant 0 : i32
    return %c0_i32, %c0_i32_0 : i32, i32
  }
  func.func @transform_1(%arg0: i32, %arg1: i32) -> (i32, i32) {
    %c0_i32 = arith.constant 0 : i32
    %c0_i32_0 = arith.constant 0 : i32
    %c0_i32_1 = arith.constant 0 : i32
    return %c0_i32, %c0_i32_0 : i32, i32
  }
  func.func @transform_2(%arg0: i32, %arg1: i32) -> (i32, i32) {
    %c0_i32 = arith.constant 0 : i32
    return %arg0, %arg1 : i32, i32
  }
  func.func @transform_3(%arg0: i32, %arg1: i32) -> (i32, i32) {
    %c0_i32 = arith.constant 0 : i32
    return %arg0, %arg1 : i32, i32
  }
}

</mosaic_0001>

<bundles_post_ra>
// kernel: tpu_custom_call.1
= control target key start
LH: loop header
LB: loop body
LE: loop exit
PB: predicated region body
PF: predicated region fallthrough
CT: control target
= control target key end

     0   :  { %8 = vsyncpa [#allocation3], 0  ;;  %s598_s0 = inlined_call_operand.vmem [shape: f32[8,1], index: 0, kind: input, shape index: {}]   ;;  %s599_s1 = inlined_call_operand.vmem [shape: f32[8,1], index: 1, kind: input, shape index: {}]   ;;  %s600_s2 = inlined_call_operand.vmem [shape: f32[6,256], index: 2, kind: input, shape index: {}]   ;;  %s601_s3 = inlined_call_operand.hbm [shape: f32[6,256], index: 3, kind: output, shape index: {}]  }
   0x1   :  { %10 = vsyncpa [#allocation3 + $0x1], 0  ;;  %s480_s12 = smov 0   ;;  %s482_s13 = smov 0  }
   0x2   :  { %s484_s14 = smov 0   ;;  %s486_s15 = smov 0  }
   0x3   :  { %s488_s16 = smov 0   ;;  %s490_s17 = smov 0  }
   0x4 LB: > { %s310_s18 = sadd.s32 4294967295, %s456_s17   ;;  %s311_s19 = sadd.s32 4294967294, %s456_s17   ;;  %s456_s17 = sphi %s490_s17, %s16_s17   ;;  %s452_s16 = sphi %s488_s16, %s608_s16   ;;  %s448_s15 = sphi %s486_s15, %s607_s15   ;;  %s444_s14 = sphi %s484_s14, %s606_s14   ;;  %s440_s13 = sphi %s482_s13, %s605_s13   ;;  %s436_s12 = sphi %s480_s12, %s604_s12  }
   0x5   : > { %s25_s20 = sadd.s32 1, %s452_s16  ;;  %s107_s21 = sadd.s32 1, %s444_s14 }
   0x6   : > { %p26_p0 = scmp.ge.s32.totalorder %s25_s20, 2  ;;  %p117_p1 = scmp.ne.s32.totalorder %s444_s14, %s440_s13 }
   0x7   : > { %p118_p2 = scmp.eq.s32.totalorder %s310_s18, 1  ;;  %p123_p3 = scmp.ne.s32.totalorder %s440_s13, %s436_s12 }
   0x8   : > { %s610_s20 = smov (%p26_p0, %s25_s20), 0  ;;  %p124_p5 = scmp.eq.s32.totalorder %s311_s19, 1 }
   0x9   : > { %p520_p4 = por %p118_p2, %p117_p1  ;;  %s103_s23 = ssub.s32 %s452_s16, %s610_s20 }
   0xa   : > { %p314_p6 = scmp.ge.s32.totalorder %s456_s17, 1  ;;  %p105_p7 = scmp.eq.s32.totalorder %s103_s23, 0 }
   0xb   : > { %p527_p8 = por %p124_p5, %p123_p3  ;;  %p159_p9 = scmp.lt.s32.totalorder %s456_s17, 3 }
   0xc   : > { %s533_s25 = scalar_select %p105_p7, %s444_s14, %s107_s21  }
   0xd   : > { %p160_p10 = pnand %p314_p6, %p159_p9 }
   0xe   : > { %v196_v0 = vld [vmem:[%s598_s0] sm:$0xff] (!%p160_p10)  ;;  %v458_v1 = vmov (!%p160_p10), 0   ;;  %p188_p11 = scmp.lt.s32.totalorder (!%p160_p10), %s448_s15, 1  ;;  %s183_s8 = sand.u32 (!%p160_p10), 1, %s440_s13  }
   0xf   : > { %163 = sbr.rel (%p160_p10) target bundleno = 168 (0xa8), region = 32  ;;  %377 = vset.pattern.permute.xlu0 (!%p160_p10), %v458_v1  ;;  %v198_v2 = vld [vmem:[%s599_s1] sm:$0xff] (!%p160_p10)  ;;  %s315_s9 = sshll.u32 (!%p160_p10), %s183_s8, 3 }
  0x10   : > { %202 = vperm.xlu0 (!%p160_p10), %377, %v196_v0   ;;  %s318_s10 = sshll.u32 (!%p160_p10), %s448_s15, 7  ;;  %s185_s11 = scalar_lea.vmem (!%p160_p10), [#allocation2], %s315_s9 }
  0x11   : > { %s231_s18 = sshll.u32 (!%p160_p10), %s185_s11, 4  ;;  %s551_s23 = scalar_lea.hbm (!%p160_p10), %s601_s3, %s318_s10  ;;  %s553_s18 = int_to_ptr.vmem [resolvable:$true] %s231_s18 }
  0x12   : > { %s216_s26 = scalar_lea.sflag (!%p160_p10), [#allocation3], %s183_s8  ;;  %s378_s27 = scalar_lea.vmem (!%p160_p10), %s553_s18, 128 }
  0x13   : > { %p379_p12 = scmp.ne.s32.totalorder (!%p160_p10), %s553_s18, %s378_s27 }
  0x14   : > { %208 = vperm.xlu0 (!%p160_p10), %377, %v198_v2  }
  0x15   : > { %p380_p13 = pnand (!%p160_p10), %p379_p12, %p520_p4 }
  0x16   : > { %s189_s30 = scalar_select %p188_p11, %s448_s15, 1 }
  0x17   : > { %p381_p0 = pneg %p380_p13  ;;  %s459_s15 = smov [#allocation2]  }
  0x18   : > { %s316_s4 = sshll.u32 %s189_s30, 3  ;;  %s382_s28 = sshll.u32 %s459_s15, 4  ;;  %s383_s28 = int_to_ptr.vmem [resolvable:$false] %s382_s28 }
  0x19   : > { %s193_s7 = scalar_lea.vmem %s600_s2, %s316_s4  ;;  %s384_s29 = scalar_lea.vmem %s383_s28, 256 }
  0x1a   : > { %v199_v4 = vld [vmem:[%s193_s7] sm:$0xff]  ;;  %p385_p1 = scmp.lt.s32.totalorder %s553_s18, %s383_s28  ;;  %p386_p2 = scmp.lt.s32.totalorder %s384_s29, %s378_s27 }
  0x1c   : > { %p387_p3 = por %p386_p2, %p385_p1 }
  0x1e   : > { %p388_p5 = pnand %p387_p3, %p381_p0 }
  0x8f   : > { %v203_v3 = vpop.permute.xlu0 %202 }
  0x90   : > { %v205_v5 = vmul.f32 %v203_v3, %v199_v4 }
  0x93   : > { %v209_v6 = vpop.permute.xlu0 %208 }
  0x94   : > { %v211_v7 = vadd.f32 %v209_v6, %v205_v5 }
  0x96   : > { %v212_v8 = vmax.f32 %v211_v7, 0.0 }
  0x98   : > { %v213_v9 = vmin.f32 %v212_v8, 1.0 }
  0x9a   : > { %214 = vst [vmem:[%s185_s11] sm:$0xff] %v213_v9 }
  0x9b   : > { %391 = shalt.err (!%p388_p5)
}
  0x9c   : > { %s392_s30 = scalar_lea.hbm %s551_s23, 128  ;;  %s396_s6 = scalar_lea.hbm %s601_s3, 256 }
  0x9d   : > { %p393_p6 = scmp.ne.s32.totalorder %s551_s23, %s392_s30  ;;  %p397_p10 = scmp.lt.u32.totalorder %s551_s23, %s601_s3 }
  0x9e   : > { %p398_p11 = scmp.lt.u32.totalorder %s396_s6, %s392_s30  ;;  %p400_p13 = scmp.lt.u32.totalorder %s392_s30, %s551_s23 }
  0x9f   : > { %p394_p7 = pnand %p393_p6, %p520_p4 }
  0xa0   : > { %p399_p12 = por %p398_p11, %p397_p10 }
  0xa1   : > { %p395_p9 = pneg %p394_p7 }
  0xa2   : > { %p401_p0 = por %p400_p13, %p399_p12 }
  0xa4   : > { %p402_p1 = pnand %p401_p0, %p395_p9 }
  0xa6   : > { %405 = shalt.err (!%p402_p1)
}
  0xa7   : > { %321 = dma.vmem_to_hbm [thread:$0]  (%p520_p4), %s553_s18, 128, %s551_s23, %s216_s26  }
  0xa8 PF: > { %p327_p2 = scmp.ge.s32.totalorder %s456_s17, 2  ;;  %s243_s9 = sand.u32 1, %s436_s12  }
  0xa9   : > { %s244_s10 = scalar_lea.sflag [#allocation3], %s243_s9 }
  0xaa   : > { %p324_p3 = pnand %p327_p2, %p527_p8 }
  0xac   : > { %431 = dma.done.wait (!%p324_p3), %s244_s10, 128  }
  0xad   : > { %433 = vsyncadd (!%p324_p3), %s244_s10, 4294967168  ;;  %s16_s17 = sadd.s32 1, %s456_s17   ;;  %s604_s12 = smov %s440_s13 }
  0xae   : > { %p13_p5 = scmp.ge.s32.totalorder %s16_s17, 4   ;;  %s605_s13 = smov %s444_s14 }
  0xaf   : > { %s606_s14 = smov %s533_s25  ;;  %s607_s15 = smov %s452_s16 }
  0xb0   : > { %s608_s16 = smov %s610_s20  ;;  %15 = sbr.rel (!%p13_p5) target bundleno = 4 (0x4), region = 69 }
  0xb7   :  { %249 = vsyncpa [#allocation3], 1 }
  0xb8   :  { %251 = vsyncpa [#allocation3 + $0x1], 1 }

</bundles_post_ra>
